<compile_context>
chip_gen: v5e
topology: v5e:2x2
jax: 0.10.0
libtpu: 0.0.40
codegen_flags: <defaults>
</compile_context>

<pallas_src>
import math

import jax
import jax.numpy as jnp
from jax.experimental import pallas as pl
from jax.experimental.pallas import tpu as pltpu


def _round_up(x, m):
    return ((x + m - 1) // m) * m


def _cdiv(a, b):
    return (a + b - 1) // b


def mlp_kernel(x_ref, w1_ref, b1_ref, w2_ref, b2_ref, o_ref):
    """Fused fc1 -> ReLU -> fc2 on one (tile_n, dim_in) batch tile."""
    x = x_ref[...]
    if x.dtype != w1_ref.dtype:
        # Cast to the MXU operand dtype in-register (avoids a wrapper-side
        # HBM read+write pass over x just to change its dtype).
        x = x.astype(w1_ref.dtype)
    # fc1 on the MXU, f32 accumulation.
    h = jnp.dot(x, w1_ref[...], preferred_element_type=jnp.float32)
    # Bias add + ReLU in f32 on the VPU (implicit (1, dim_hid) broadcast).
    h = jnp.maximum(h + b1_ref[...], 0.0)
    # fc2; hidden activations are cast to the weight dtype only for the MXU pass.
    out = jnp.dot(h.astype(w2_ref.dtype), w2_ref[...],
                  preferred_element_type=jnp.float32)
    o_ref[...] = (out + b2_ref[...]).astype(o_ref.dtype)


def _chip_plan():
    """Generation-aware VMEM budget / tiling knobs (from device_kind)."""
    kind = ""
    try:
        kind = jax.devices()[0].device_kind.lower()
    except Exception:
        pass
    is_v7 = ("v7" in kind) or ("7x" in kind)
    if is_v7:
        # 64 MiB VMEM per TC, 2 TensorCores: leave headroom, split the grid.
        return dict(two_cores=True,
                    vmem_budget=48 * 1024 * 1024,
                    vmem_limit_cap=52 * 1024 * 1024,
                    tile_cap=2048)
    # v5e / v6e: 128 MiB VMEM, single TC -> one maximal tile when it fits.
    return dict(two_cores=False,
                vmem_budget=80 * 1024 * 1024,
                vmem_limit_cap=100 * 1024 * 1024,
                tile_cap=4096)


def node_classification_forward(x, w1, b1, w2, b2, *, tile_n=None,
                                param_dtype=jnp.bfloat16):
    """Fused fc1 -> ReLU -> fc2.

    x:  [N, dim_in] (any float dtype; passed to the kernel unmodified)
    w1: [dim_in, dim_hid], w2: [dim_hid, num_class]  (transpose of torch Linear.weight)
    b1: [dim_hid] or [1, dim_hid], b2: [num_class] or [1, num_class]
    Returns [N, num_class] logits in x.dtype.
    param_dtype=jnp.float32 gives bit-closer parity with the f32 PyTorch module.
    """
    N, dim_in = x.shape
    dim_hid = w1.shape[1]
    num_class = w2.shape[1]
    out_dtype = x.dtype

    # One-time, tiny casts: weights to the MXU dtype, biases to f32 row vectors.
    w1 = jnp.asarray(w1, param_dtype)
    w2 = jnp.asarray(w2, param_dtype)
    b1 = jnp.asarray(b1, jnp.float32).reshape(1, dim_hid)
    b2 = jnp.asarray(b2, jnp.float32).reshape(1, num_class)

    x_bytes = jnp.dtype(x.dtype).itemsize
    p_bytes = jnp.dtype(param_dtype).itemsize
    o_bytes = jnp.dtype(out_dtype).itemsize

    plan = _chip_plan()

    # Resident weight/bias footprint, budgeted at the conservative
    # double-buffered factor (constant index_map => fetched only once anyway).
    weight_bytes = 2 * ((dim_in * dim_hid + dim_hid * num_class) * p_bytes
                        + (dim_hid + num_class) * 4)
    # Per batch-row VMEM: double-buffered x tile + double-buffered out tile +
    # f32 hidden + narrow copies fed to the MXU + f32 logits intermediate.
    per_row = (2 * dim_in * x_bytes + 2 * num_class * o_bytes
               + dim_hid * (4 + p_bytes) + dim_in * p_bytes + num_class * 4)

    if tile_n is None:
        avail = max(plan["vmem_budget"] - weight_bytes, 16 * per_row)
        tile_n = min(avail // per_row, plan["tile_cap"], _round_up(N, 16))
        if plan["two_cores"] and N > 16:
            # >= 2 grid steps so ("parallel",) can shard across both v7x TCs.
            tile_n = min(tile_n, _round_up(_cdiv(N, 2), 16))
    tile_n = max(16, (int(tile_n) // 16) * 16)   # bf16 vreg packs 16 rows/sublane group
    grid = (_cdiv(N, tile_n),)                   # ragged last tile: Pallas masks it

    vmem_limit = int(min(plan["vmem_limit_cap"],
                         max(16 * 1024 * 1024,
                             weight_bytes + tile_n * per_row + (4 << 20))))

    cost = pl.CostEstimate(
        flops=2 * N * (dim_in * dim_hid + dim_hid * num_class),
        transcendentals=0,
        bytes_accessed=int(N * dim_in * x_bytes
                           + (dim_in * dim_hid + dim_hid * num_class) * p_bytes
                           + (dim_hid + num_class) * 4
                           + N * num_class * o_bytes),
    )

    resident = lambda i: (0, 0)

    return pl.pallas_call(
        mlp_kernel,
        out_shape=jax.ShapeDtypeStruct((N, num_class), out_dtype),
        grid_spec=pltpu.PrefetchScalarGridSpec(
            num_scalar_prefetch=0,
            grid=grid,
            in_specs=[
                pl.BlockSpec((tile_n, dim_in), lambda i: (i, 0)),   # x tile (pipelined)
                pl.BlockSpec((dim_in, dim_hid), resident),          # W1 (resident)
                pl.BlockSpec((1, dim_hid), resident),               # b1
                pl.BlockSpec((dim_hid, num_class), resident),       # W2
                pl.BlockSpec((1, num_class), resident),             # b2
            ],
            out_specs=pl.BlockSpec((tile_n, num_class), lambda i: (i, 0)),
        ),
        compiler_params=pltpu.CompilerParams(
            dimension_semantics=("parallel",),
            vmem_limit_bytes=vmem_limit,
        ),
        cost_estimate=cost,
    )(x, w1, b1, w2, b2)


def init_linear_params(key, fan_in, fan_out, dtype=jnp.float32):
    # Mimic PyTorch nn.Linear default init: U(-1/sqrt(fan_in), 1/sqrt(fan_in))
    kw, kb = jax.random.split(key)
    bound = 1.0 / math.sqrt(fan_in)
    w = jax.random.uniform(kw, (fan_in, fan_out), dtype, -bound, bound)
    b = jax.random.uniform(kb, (1, fan_out), dtype, -bound, bound)
    return w, b


if __name__ == "__main__":
    # Small shapes consistent with the module; N=50 exercises the ragged batch
    # tile (masked boundary handling, no wrapper-side padding).
    N, dim_in, dim_hid, num_class = 50, 32, 32, 8

    key = jax.random.PRNGKey(0)
    kx, k1, k2 = jax.random.split(key, 3)

    x = jax.random.normal(kx, (N, dim_in), jnp.float32)
    w1, b1 = init_linear_params(k1, dim_in, dim_hid)
    w2, b2 = init_linear_params(k2, dim_hid, num_class)

    out = node_classification_forward(x, w1, b1, w2, b2)
    out = jax.block_until_ready(out)

    # Pure-JAX f32 reference (kernel uses bf16 operands with f32 accumulation,
    # so compare with a bf16-appropriate tolerance).
    ref = jnp.maximum(x @ w1 + b1, 0.0) @ w2 + b2
    assert out.shape == (N, num_class)
    assert jnp.allclose(out, ref, atol=2e-2, rtol=2e-2), "mismatch vs reference"

    print("KERNEL_OK")
</pallas_src>

<mosaic_0001>
module attributes {stable_mosaic.version = 11 : i64} {
  func.func @mlp_kernel(%arg0: i32, %arg1: memref<64x32xf32, #tpu.memory_space<vmem>>, %arg2: memref<32x32xbf16, #tpu.memory_space<vmem>>, %arg3: memref<1x32xf32, #tpu.memory_space<vmem>>, %arg4: memref<32x8xbf16, #tpu.memory_space<vmem>>, %arg5: memref<1x8xf32, #tpu.memory_space<vmem>>, %arg6: memref<64x8xf32, #tpu.memory_space<vmem>>) attributes {dimension_semantics = [#tpu.dimension_semantics<parallel>], iteration_bounds = array<i64: 1>, scalar_prefetch = 0 : i64, scratch_operands = 0 : i64, tpu.core_type = #tpu.core_type<tc>, window_params = [{transform_indices = @transform_0, window_bounds = array<i64: 64, 32>}, {pipeline_mode = #tpu.pipeline_mode<synchronous>, transform_indices = @transform_1, window_bounds = array<i64: 32, 32>}, {pipeline_mode = #tpu.pipeline_mode<synchronous>, transform_indices = @transform_2, window_bounds = array<i64: 1, 32>}, {pipeline_mode = #tpu.pipeline_mode<synchronous>, transform_indices = @transform_3, window_bounds = array<i64: 32, 8>}, {pipeline_mode = #tpu.pipeline_mode<synchronous>, transform_indices = @transform_4, window_bounds = array<i64: 1, 8>}, {transform_indices = @transform_5, window_bounds = array<i64: 64, 8>}]} {
    %c0 = arith.constant 0 : index
    %c0_0 = arith.constant 0 : index
    %0 = vector.load %arg1[%c0, %c0_0] : memref<64x32xf32, #tpu.memory_space<vmem>>, vector<64x32xf32>
    %1 = arith.truncf %0 : vector<64x32xf32> to vector<64x32xbf16>
    %c0_1 = arith.constant 0 : index
    %c0_2 = arith.constant 0 : index
    %2 = vector.load %arg2[%c0_1, %c0_2] : memref<32x32xbf16, #tpu.memory_space<vmem>>, vector<32x32xbf16>
    %cst = arith.constant dense<0.000000e+00> : vector<64x32xf32>
    %3 = tpu.matmul %1, %2, %cst {dimension_numbers = #tpu.dot_dimension_numbers<[1], [0], [0], [1], [0, 0, 1, 1], [], []>} : vector<64x32xbf16>, vector<32x32xbf16>, vector<64x32xf32> -> vector<64x32xf32>
    %c0_3 = arith.constant 0 : index
    %c0_4 = arith.constant 0 : index
    %4 = vector.load %arg3[%c0_3, %c0_4] : memref<1x32xf32, #tpu.memory_space<vmem>>, vector<1x32xf32>
    %5 = vector.broadcast %4 : vector<1x32xf32> to vector<64x32xf32>
    %6 = arith.addf %3, %5 : vector<64x32xf32>
    %cst_5 = arith.constant 0.000000e+00 : f32
    %7 = vector.broadcast %cst_5 : f32 to vector<64x32xf32>
    %8 = arith.maximumf %6, %7 : vector<64x32xf32>
    %9 = arith.truncf %8 : vector<64x32xf32> to vector<64x32xbf16>
    %c0_6 = arith.constant 0 : index
    %c0_7 = arith.constant 0 : index
    %10 = vector.load %arg4[%c0_6, %c0_7] : memref<32x8xbf16, #tpu.memory_space<vmem>>, vector<32x8xbf16>
    %cst_8 = arith.constant dense<0.000000e+00> : vector<64x8xf32>
    %11 = tpu.matmul %9, %10, %cst_8 {dimension_numbers = #tpu.dot_dimension_numbers<[1], [0], [0], [1], [0, 0, 1, 1], [], []>} : vector<64x32xbf16>, vector<32x8xbf16>, vector<64x8xf32> -> vector<64x8xf32>
    %c0_9 = arith.constant 0 : index
    %c0_10 = arith.constant 0 : index
    %12 = vector.load %arg5[%c0_9, %c0_10] : memref<1x8xf32, #tpu.memory_space<vmem>>, vector<1x8xf32>
    %13 = vector.broadcast %12 : vector<1x8xf32> to vector<64x8xf32>
    %14 = arith.addf %11, %13 : vector<64x8xf32>
    %c0_11 = arith.constant 0 : index
    %c0_12 = arith.constant 0 : index
    %15 = vector.load %arg6[%c0_11, %c0_12] : memref<64x8xf32, #tpu.memory_space<vmem>>, vector<64x8xf32>
    tpu.vector_store %arg6[%c0_11, %c0_12], %14 {strides = array<i32>} : memref<64x8xf32, #tpu.memory_space<vmem>>, vector<64x8xf32>,
    return
  }
  func.func @transform_0(%arg0: i32) -> (i32, i32) {
    %c0_i32 = arith.constant 0 : i32
    %c0_i32_0 = arith.constant 0 : i32
    return %arg0, %c0_i32 : i32, i32
  }
  func.func @transform_1(%arg0: i32) -> (i32, i32) {
    %c0_i32 = arith.constant 0 : i32
    %c0_i32_0 = arith.constant 0 : i32
    %c0_i32_1 = arith.constant 0 : i32
    return %c0_i32, %c0_i32_0 : i32, i32
  }
  func.func @transform_2(%arg0: i32) -> (i32, i32) {
    %c0_i32 = arith.constant 0 : i32
    %c0_i32_0 = arith.constant 0 : i32
    %c0_i32_1 = arith.constant 0 : i32
    return %c0_i32, %c0_i32_0 : i32, i32
  }
  func.func @transform_3(%arg0: i32) -> (i32, i32) {
    %c0_i32 = arith.constant 0 : i32
    %c0_i32_0 = arith.constant 0 : i32
    %c0_i32_1 = arith.constant 0 : i32
    return %c0_i32, %c0_i32_0 : i32, i32
  }
  func.func @transform_4(%arg0: i32) -> (i32, i32) {
    %c0_i32 = arith.constant 0 : i32
    %c0_i32_0 = arith.constant 0 : i32
    %c0_i32_1 = arith.constant 0 : i32
    return %c0_i32, %c0_i32_0 : i32, i32
  }
  func.func @transform_5(%arg0: i32) -> (i32, i32) {
    %c0_i32 = arith.constant 0 : i32
    %c0_i32_0 = arith.constant 0 : i32
    return %arg0, %c0_i32 : i32, i32
  }
}

</mosaic_0001>

<bundles_post_ra>
// kernel: tpu_custom_call.1
= control target key start
LH: loop header
LB: loop body
LE: loop exit
PB: predicated region body
PF: predicated region fallthrough
CT: control target
= control target key end

     0   :  { %vm53_vm0 = vcmask 261120   ;;  %vm168_vm1 = vcmask 64512   ;;  %s384_s0 = inlined_call_operand.vmem [shape: f32[50,32], index: 0, kind: input, shape index: {}]   ;;  %s385_s1 = inlined_call_operand.vmem [shape: bf16[32,32], index: 1, kind: input, shape index: {}]   ;;  %s386_s2 = inlined_call_operand.vmem [shape: f32[1,32], index: 2, kind: input, shape index: {}]   ;;  %s387_s3 = inlined_call_operand.vmem [shape: bf16[32,8], index: 3, kind: input, shape index: {}]   ;;  %s388_s4 = inlined_call_operand.vmem [shape: f32[1,8], index: 4, kind: input, shape index: {}]   ;;  %s389_s5 = inlined_call_operand.vmem [shape: f32[50,8], index: 5, kind: output, shape index: {}]  }
   0x1   :  { %v267_v0 = vld [vmem:[%s385_s1 + $0x8] sm:$0xff]  ;;  %v266_v1 = vld [vmem:[%s385_s1] sm:$0xff]  ;;  %v23_v8 = vld [vmem:[%s384_s0 + $0x10] sm:$0xff] }
   0x2   :  { %v21_v2 = vld [vmem:[%s384_s0] sm:$0xff]  ;;  %72 = vmatpush.bf16.msra.mxu0 %v267_v0  ;;  %270 = vmatpush.bf16.msra.mxu2 %v267_v0  ;;  %v22_v3 = vld [vmem:[%s384_s0 + $0x8] sm:$0xff]  ;;  %v24_v9 = vld [vmem:[%s384_s0 + $0x18] sm:$0xff] }
   0x3   :  { %v25_v4 = vld [vmem:[%s384_s0 + $0x20] sm:$0xff]  ;;  %v26_v5 = vld [vmem:[%s384_s0 + $0x28] sm:$0xff]  ;;  %v29_v6 = vpack.c.bf16 %v22_v3, %v21_v2  ;;  %v27_v10 = vld [vmem:[%s384_s0 + $0x30] sm:$0xff]  ;;  %v30_v12 = vpack.c.bf16 %v24_v9, %v23_v8 }
   0x4   :  { %v31_v7 = vpack.c.bf16 %v26_v5, %v25_v4  ;;  %v28_v11 = vld [vmem:[%s384_s0 + $0x38] sm:$0xff]  ;;  %v269_v14 = vld [vmem:[%s387_s3 + $0x8] sm:$0xff]  ;;  %v268_v15 = vld [vmem:[%s387_s3] sm:$0xff] }
   0x5   :  { %v32_v13 = vpack.c.bf16 %v28_v11, %v27_v10  ;;  %145 = vmatpush.bf16.msra.mxu1 %v269_v14  ;;  %272 = vmatpush.bf16.msra.mxu3 %v269_v14  ;;  %v274_v17 = vld [vmem:[%s386_s2] ss:$0 sm:$0xff] }
   0x6   :  { %73 = vmatpush.bf16.msra.mxu0 %v266_v1  ;;  %271 = vmatpush.bf16.msra.mxu2 %v266_v1  ;;  %v275_v45 = vld [vmem:[%s388_s4] ss:$0 sm:$0xff] }
   0x9   :  { %250 = vmatmul.msk.bf16.vlgmr.msra.gmra.mxu0 %vm53_vm0, %v29_v6  ;;  %252 = vmatmul.msk.bf16.vlgmr.msra.gmra.mxu2 %vm53_vm0, %v31_v7 }
   0xa   :  { %146 = vmatpush.bf16.msra.mxu1 %v268_v15  ;;  %273 = vmatpush.bf16.msra.mxu3 %v268_v15 }
  0x19   :  { %251 = vmatmul.msk.bf16.gmra.mxu0 %vm53_vm0, %v30_v12  ;;  %253 = vmatmul.msk.bf16.gmra.mxu2 %vm53_vm0, %v32_v13 }
  0x86   :  { %v75_v16 = vpop.f32.mrf.mxu0 }
  0x87   :  { %v76_v19 = vadd.f32 %v274_v17, %v75_v16 }
  0x89   :  { %v95_v22 = vmax.f32 %v76_v19, 0.0 }
  0x8c   :  { %v85_v18 = vpop.f32.mrf.mxu2 }
  0x8d   :  { %v86_v24 = vadd.f32 %v274_v17, %v85_v18 }
  0x8e   :  { %v77_v20 = vpop.f32.mrf.mxu0 }
  0x8f   :  { %v78_v21 = vadd.f32 %v274_v17, %v77_v20  ;;  %v99_v29 = vmax.f32 %v86_v24, 0.0 }
  0x91   :  { %v96_v23 = vmax.f32 %v78_v21, 0.0 }
  0x93   :  { %v103_v25 = vpack.c.bf16 %v96_v23, %v95_v22 }
  0x94   :  { %v87_v26 = vpop.f32.mrf.mxu2 }
  0x95   :  { %v88_v27 = vadd.f32 %v274_v17, %v87_v26  ;;  %262 = vmatmul.msk.bf16.vlgmr.msra.gmra.mxu1 %vm53_vm0, %v103_v25 }
  0x96   :  { %v80_v28 = vpop.f32.mrf.mxu0 }
  0x97   :  { %v100_v30 = vmax.f32 %v88_v27, 0.0  ;;  %v81_v33 = vadd.f32 %v274_v17, %v80_v28 }
  0x99   :  { %v105_v31 = vpack.c.bf16 %v100_v30, %v99_v29  ;;  %v97_v36 = vmax.f32 %v81_v33, 0.0 }
  0x9b   :  { %264 = vmatmul.msk.bf16.vlgmr.msra.gmra.mxu3 %vm53_vm0, %v105_v31 }
  0x9c   :  { %v90_v32 = vpop.f32.mrf.mxu2 }
  0x9d   :  { %v91_v38 = vadd.f32 %v274_v17, %v90_v32 }
  0x9e   :  { %v82_v34 = vpop.f32.mrf.mxu0 }
  0x9f   :  { %v83_v35 = vadd.f32 %v274_v17, %v82_v34  ;;  %v101_v42 = vmax.f32 %v91_v38, 0.0 }
  0xa1   :  { %v98_v37 = vmax.f32 %v83_v35, 0.0 }
  0xa3   :  { %v104_v39 = vpack.c.bf16 %v98_v37, %v97_v36 }
  0xa4   :  { %v92_v40 = vpop.f32.mrf.mxu2 }
  0xa5   :  { %v93_v41 = vadd.f32 %v274_v17, %v92_v40  ;;  %263 = vmatmul.msk.bf16.gmra.mxu1 %vm53_vm0, %v104_v39 }
  0xa7   :  { %v102_v43 = vmax.f32 %v93_v41, 0.0 }
  0xa9   :  { %v106_v44 = vpack.c.bf16 %v102_v43, %v101_v42 }
  0xab   :  { %265 = vmatmul.msk.bf16.gmra.mxu3 %vm53_vm0, %v106_v44 }
 0x112   :  { %v148_v46 = vpop.f32.mrf.mxu1 }
 0x113   :  { %v149_v47 = vadd.f32 %v275_v45, %v148_v46 }
 0x115   :  { %169 = vst.msk [vmem:[#allocation2] sm:$0xff] %vm168_vm1, %v149_v47 }
 0x11a   :  { %v150_v48 = vpop.f32.mrf.mxu1 }
 0x11b   :  { %v151_v49 = vadd.f32 %v275_v45, %v150_v48 }
 0x11c   :  { %v219_v50 = vld [vmem:[#allocation2] sm:$0xff] }
 0x11d   :  { %220 = vst [vmem:[%s389_s5] sm:$0xff] %v219_v50 }
 0x11e   :  { %170 = vst.msk [vmem:[#allocation2 + $0x8] sm:$0xff] %vm168_vm1, %v151_v49  ;;  %v158_v51 = vpop.f32.mrf.mxu3 }
 0x11f   :  { %v159_v52 = vadd.f32 %v275_v45, %v158_v51 }
 0x121   :  { %173 = vst.msk [vmem:[#allocation2 + $0x20] sm:$0xff] %vm168_vm1, %v159_v52 }
 0x122   :  { %v153_v53 = vpop.f32.mrf.mxu1 }
 0x123   :  { %v154_v54 = vadd.f32 %v275_v45, %v153_v53 }
 0x125   :  { %v221_v55 = vld [vmem:[#allocation2 + $0x8] sm:$0xff]  ;;  %171 = vst.msk [vmem:[#allocation2 + $0x10] sm:$0xff] %vm168_vm1, %v154_v54 }
 0x126   :  { %222 = vst [vmem:[%s389_s5 + $0x8] sm:$0xff] %v221_v55  ;;  %v160_v56 = vpop.f32.mrf.mxu3 }
 0x127   :  { %v161_v57 = vadd.f32 %v275_v45, %v160_v56 }
 0x128   :  { %v227_v58 = vld [vmem:[#allocation2 + $0x20] sm:$0xff] }
 0x129   :  { %228 = vst [vmem:[%s389_s5 + $0x20] sm:$0xff] %v227_v58 }
 0x12a   :  { %174 = vst.msk [vmem:[#allocation2 + $0x28] sm:$0xff] %vm168_vm1, %v161_v57  ;;  %v155_v59 = vpop.f32.mrf.mxu1 }
 0x12b   :  { %v156_v60 = vadd.f32 %v275_v45, %v155_v59 }
 0x12c   :  { %v223_v61 = vld [vmem:[#allocation2 + $0x10] sm:$0xff] }
 0x12d   :  { %224 = vst [vmem:[%s389_s5 + $0x10] sm:$0xff] %v223_v61 }
 0x12e   :  { %172 = vst.msk [vmem:[#allocation2 + $0x18] sm:$0xff] %vm168_vm1, %v156_v60  ;;  %v163_v62 = vpop.f32.mrf.mxu3 }
 0x12f   :  { %v164_v63 = vadd.f32 %v275_v45, %v163_v62 }
 0x131   :  { %v229_v0 = vld [vmem:[#allocation2 + $0x28] sm:$0xff]  ;;  %175 = vst.msk [vmem:[#allocation2 + $0x30] sm:$0xff] %vm168_vm1, %v164_v63 }
 0x132   :  { %230 = vst [vmem:[%s389_s5 + $0x28] sm:$0xff] %v229_v0 }
 0x135   :  { %v225_v1 = vld [vmem:[#allocation2 + $0x18] sm:$0xff] }
 0x136   :  { %226 = vst [vmem:[%s389_s5 + $0x18] sm:$0xff] %v225_v1  ;;  %v165_v2 = vpop.f32.mrf.mxu3 }
 0x138   :  { %v231_v3 = vld [vmem:[#allocation2 + $0x30] sm:$0xff] }
 0x139   :  { %232 = vst [vmem:[%s389_s5 + $0x30] sm:$0xff] %v231_v3 }

</bundles_post_ra>
